<compile_context>
chip_gen: v5e
topology: v5e:2x2
jax: 0.10.0
libtpu: 0.0.40
codegen_flags: <defaults>
</compile_context>

<pallas_src>
import numpy as np
import jax
import jax.numpy as jnp
from jax import lax
from jax.experimental import pallas as pl
from jax.experimental.pallas import tpu as pltpu

H = W = 8          # input spatial size
B = 2              # batch

# packed-parameter row offsets (all multiples of 8)
_OFF_W1,  _OFF_B1  = 0,   16     # (16,56),  (1,56)
_OFF_W2,  _OFF_B2  = 24,  136    # (112,96), (1,96)
_OFF_WL1, _OFF_BL1 = 144, 288    # (144,128),(1,128)
_OFF_WL2, _OFF_BL2 = 296, 424    # (128,128),(1,128)
_OFF_WL3, _OFF_BL3 = 432, 560    # (128,128),(1,128)
_PACK_ROWS = 568


# ----------------------------------------------------------------------------
# Pallas kernel: the whole forward pass (tiny model, everything fits in VMEM).
# ----------------------------------------------------------------------------
def demo_kernel(x_ref, p_ref, out_ref):
    # x_ref: (B*8, 8)   rows = b*8 + i, lanes = j   (Cin = 1)
    # p_ref: (568, 128) packed parameters
    bsz = x_ref.shape[0] // 8
    x = x_ref[...]

    # ---- static, aligned slices out of the single packed parameter buffer --
    W1  = p_ref[_OFF_W1:_OFF_W1 + 16, 0:56]      # (16, 56)  Toeplitz conv1
    b1  = p_ref[_OFF_B1:_OFF_B1 + 1, 0:56]       # (1, 56)
    W2  = p_ref[_OFF_W2:_OFF_W2 + 112, 0:96]     # (112, 96) Toeplitz conv2
    b2  = p_ref[_OFF_B2:_OFF_B2 + 1, 0:96]       # (1, 96)
    WL1 = p_ref[_OFF_WL1:_OFF_WL1 + 144, :]      # (144, 128)
    BL1 = p_ref[_OFF_BL1:_OFF_BL1 + 1, :]        # (1, 128)
    WL2 = p_ref[_OFF_WL2:_OFF_WL2 + 128, :]      # (128, 128)
    BL2 = p_ref[_OFF_BL2:_OFF_BL2 + 1, :]        # (1, 128)
    WL3 = p_ref[_OFF_WL3:_OFF_WL3 + 128, :]      # (128, 128)
    BL3 = p_ref[_OFF_BL3:_OFF_BL3 + 1, :]        # (1, 128)

    def row_shift(src, rows_in, rows_out, di):
        # per-batch rows [di, di+rows_out) of src, stacked -> (B*rows_out, C)
        return jnp.concatenate(
            [src[b * rows_in + di: b * rows_in + di + rows_out, :] for b in range(bsz)],
            axis=0)

    # ---- conv1 as one matmul: (B*7, 16) @ (16, 56) --------------------------
    # P1 lanes: di*8 + j'  ;  r1 lanes: j*8 + c  (7 output cols x 8 channels)
    P1 = jnp.concatenate([row_shift(x, 8, 7, 0), row_shift(x, 8, 7, 1)], axis=1)
    r1 = jnp.maximum(jnp.dot(P1, W1, preferred_element_type=jnp.float32) + b1, 0.0)

    # ---- conv2 as one matmul: (B*6, 112) @ (112, 96) ------------------------
    # P2 lanes: di*56 + j'*8 + cin ; r2 lanes: j*16 + c (6 cols x 16 channels)
    P2 = jnp.concatenate([row_shift(r1, 7, 6, 0), row_shift(r1, 7, 6, 1)], axis=1)
    r2 = jnp.maximum(jnp.dot(P2, W2, preferred_element_type=jnp.float32) + b2, 0.0)

    # ---- maxpool 2x2 + flatten (fused, stays 2D) ----------------------------
    # column (j) pooling: max over j = 2*pj, 2*pj+1
    ce = jnp.concatenate([r2[:, 0:16],  r2[:, 32:48], r2[:, 64:80]], axis=1)
    co = jnp.concatenate([r2[:, 16:32], r2[:, 48:64], r2[:, 80:96]], axis=1)
    cm = jnp.maximum(ce, co)                       # (B*6, 48): lanes = pj*16 + c
    # row (i) pooling + flatten: (B, 144), lanes = pi*48 + pj*16 + c
    flat_rows = []
    for b in range(bsz):
        segs = [jnp.maximum(cm[b * 6 + 2 * pi: b * 6 + 2 * pi + 1, :],
                            cm[b * 6 + 2 * pi + 1: b * 6 + 2 * pi + 2, :])
                for pi in range(3)]
        flat_rows.append(jnp.concatenate(segs, axis=1))
    flat = jnp.concatenate(flat_rows, axis=0)      # (B, 144)

    # ---- linear stack (all lane-padded to 128 wide -> lane-dense stores) ----
    h1 = jnp.maximum(jnp.dot(flat, WL1, preferred_element_type=jnp.float32) + BL1, 0.0)
    h2 = jnp.maximum(jnp.dot(h1, WL2, preferred_element_type=jnp.float32) + BL2, 0.0)
    h3 = jnp.dot(h2, WL3, preferred_element_type=jnp.float32) + BL3
    out_ref[...] = jnp.tanh(h3)                    # (B, 128); column 0 is the real output


# ----------------------------------------------------------------------------
# Wrapper: layout conversion (glue) + pallas_call.
# ----------------------------------------------------------------------------
def demo_forward(x_nchw, packed_params):
    bsz = x_nchw.shape[0]
    x2d = x_nchw.astype(jnp.float32).reshape(bsz * H, W)   # (B*8, 8): Cin=1, pure layout
    out = pl.pallas_call(
        demo_kernel,
        out_shape=jax.ShapeDtypeStruct((bsz, 128), jnp.float32),
        in_specs=[pl.BlockSpec(memory_space=pltpu.MemorySpace.VMEM),
                  pl.BlockSpec(memory_space=pltpu.MemorySpace.VMEM)],
        out_specs=pl.BlockSpec(memory_space=pltpu.MemorySpace.VMEM),
        # No grid: the whole problem fits one TensorCore invocation.  If B ever
        # grows, add a batch grid axis marked "parallel" (v7x: 2 TCs/chip).
    )(x2d, packed_params)
    return out[:, :1]


# ----------------------------------------------------------------------------
# Deterministic parameter init (PyTorch-shaped).
# ----------------------------------------------------------------------------
def init_pt_params(key):
    ks = jax.random.split(key, 10)

    def unif(k, shape, fan_in):
        bound = 1.0 / np.sqrt(fan_in)
        return jax.random.uniform(k, shape, jnp.float32, -bound, bound)

    w1 = unif(ks[0], (8, 1, 2, 2), 1 * 2 * 2)     # OIHW
    b1 = unif(ks[1], (8,), 1 * 2 * 2)
    w2 = unif(ks[2], (16, 8, 2, 2), 8 * 2 * 2)
    b2 = unif(ks[3], (16,), 8 * 2 * 2)
    wl1 = unif(ks[4], (70, 144), 144)             # torch Linear: (out, in)
    bl1 = unif(ks[5], (70,), 144)
    wl2 = unif(ks[6], (50, 70), 70)
    bl2 = unif(ks[7], (50,), 70)
    wl3 = unif(ks[8], (1, 50), 50)
    bl3 = unif(ks[9], (1,), 50)
    return (w1, b1, w2, b2, wl1, bl1, wl2, bl2, wl3, bl3)


# ----------------------------------------------------------------------------
# Host-side weight preprocessing: Toeplitz conv weights, permuted/padded
# linear weights, all packed into a single (568, 128) f32 buffer.
# ----------------------------------------------------------------------------
def pack_params(pt):
    w1, b1, w2, b2, wl1, bl1, wl2, bl2, wl3, bl3 = [np.asarray(p, np.float32) for p in pt]

    # conv1: r1[(b,i), j*8+c] = sum_{di,j'} P1[(b,i), di*8+j'] * W1[di*8+j', j*8+c]
    #        W1 nonzero iff dj = j'-j in {0,1}:  W1[di*8+j+dj, j*8+c] = w1[c,0,di,dj]
    W1 = np.zeros((16, 56), np.float32)
    for di in range(2):
        for dj in range(2):
            for j in range(7):
                W1[di * 8 + j + dj, j * 8:(j + 1) * 8] = w1[:, 0, di, dj]
    b1row = np.tile(b1, 7)[None, :]                                  # (1, 56)

    # conv2: k = di*56 + j'*8 + cin ;  W2[k, j*16+c] = w2[c, cin, di, j'-j]
    W2 = np.zeros((112, 96), np.float32)
    for di in range(2):
        for dj in range(2):
            for j in range(6):
                for cin in range(8):
                    W2[di * 56 + (j + dj) * 8 + cin, j * 16:(j + 1) * 16] = w2[:, cin, di, dj]
    b2row = np.tile(b2, 6)[None, :]                                  # (1, 96)

    # linear1: kernel lane order is pi*48 + pj*16 + c ; torch flatten is c*9 + pi*3 + pj
    WL1 = np.zeros((144, 128), np.float32)
    for pi in range(3):
        for pj in range(3):
            for c in range(16):
                WL1[pi * 48 + pj * 16 + c, 0:70] = wl1[:, c * 9 + pi * 3 + pj]
    BL1 = np.zeros((1, 128), np.float32); BL1[0, 0:70] = bl1

    WL2 = np.zeros((128, 128), np.float32); WL2[0:70, 0:50] = wl2.T
    BL2 = np.zeros((1, 128), np.float32);   BL2[0, 0:50] = bl2
    WL3 = np.zeros((128, 128), np.float32); WL3[0:50, 0:1] = wl3.T
    BL3 = np.zeros((1, 128), np.float32);   BL3[0, 0:1] = bl3

    packed = np.zeros((_PACK_ROWS, 128), np.float32)

    def put(off, arr):
        packed[off:off + arr.shape[0], 0:arr.shape[1]] = arr

    put(_OFF_W1, W1);   put(_OFF_B1, b1row)
    put(_OFF_W2, W2);   put(_OFF_B2, b2row)
    put(_OFF_WL1, WL1); put(_OFF_BL1, BL1)
    put(_OFF_WL2, WL2); put(_OFF_BL2, BL2)
    put(_OFF_WL3, WL3); put(_OFF_BL3, BL3)
    return jnp.asarray(packed)


# ----------------------------------------------------------------------------
# Pure-JAX reference (mirrors the PyTorch forward exactly, NCHW), for checking.
# ----------------------------------------------------------------------------
def ref_forward(x_nchw, pt):
    w1, b1, w2, b2, wl1, bl1, wl2, bl2, wl3, bl3 = pt
    y = lax.conv_general_dilated(x_nchw, w1, (1, 1), 'VALID',
                                 dimension_numbers=('NCHW', 'OIHW', 'NCHW'))
    y = jnp.maximum(y + b1[None, :, None, None], 0.0)
    y = lax.conv_general_dilated(y, w2, (1, 1), 'VALID',
                                 dimension_numbers=('NCHW', 'OIHW', 'NCHW'))
    y = jnp.maximum(y + b2[None, :, None, None], 0.0)
    y = lax.reduce_window(y, -jnp.inf, lax.max, (1, 1, 2, 2), (1, 1, 2, 2), 'VALID')
    y = y.reshape(y.shape[0], -1)                  # (B, 144) in (c, pi, pj) order
    y = jnp.maximum(y @ wl1.T + bl1, 0.0)
    y = jnp.maximum(y @ wl2.T + bl2, 0.0)
    y = jnp.tanh(y @ wl3.T + bl3)
    return y


if __name__ == "__main__":
    key = jax.random.PRNGKey(0)
    kx, kp = jax.random.split(key)

    x = jax.random.normal(kx, (B, 1, H, W), dtype=jnp.float32)   # NCHW, like torch

    pt_params = init_pt_params(kp)
    packed = pack_params(pt_params)

    out = demo_forward(x, packed)
    out = jax.block_until_ready(out)

    ref = jax.block_until_ready(ref_forward(x, pt_params))

    assert out.shape == (B, 1), out.shape
    np.testing.assert_allclose(np.asarray(out), np.asarray(ref), rtol=1e-3, atol=1e-4)

    print("KERNEL_OK")
</pallas_src>

<mosaic_0001>
module attributes {stable_mosaic.version = 11 : i64} {
  func.func @demo_kernel(%arg0: memref<16x8xf32, #tpu.memory_space<vmem>>, %arg1: memref<568x128xf32, #tpu.memory_space<vmem>>, %arg2: memref<2x128xf32, #tpu.memory_space<vmem>>) attributes {dimension_semantics = [], scalar_prefetch = 0 : i64, scratch_operands = 0 : i64, tpu.core_type = #tpu.core_type<tc>} {
    %c0 = arith.constant 0 : index
    %c0_0 = arith.constant 0 : index
    %0 = vector.load %arg0[%c0, %c0_0] : memref<16x8xf32, #tpu.memory_space<vmem>>, vector<16x8xf32>
    %c0_1 = arith.constant 0 : index
    %c0_2 = arith.constant 0 : index
    %1 = vector.load %arg1[%c0_1, %c0_2] : memref<568x128xf32, #tpu.memory_space<vmem>>, vector<16x56xf32>
    %c16 = arith.constant 16 : index
    %c0_3 = arith.constant 0 : index
    %2 = vector.load %arg1[%c16, %c0_3] : memref<568x128xf32, #tpu.memory_space<vmem>>, vector<1x56xf32>
    %c24 = arith.constant 24 : index
    %c0_4 = arith.constant 0 : index
    %3 = vector.load %arg1[%c24, %c0_4] : memref<568x128xf32, #tpu.memory_space<vmem>>, vector<112x96xf32>
    %c136 = arith.constant 136 : index
    %c0_5 = arith.constant 0 : index
    %4 = vector.load %arg1[%c136, %c0_5] : memref<568x128xf32, #tpu.memory_space<vmem>>, vector<1x96xf32>
    %c144 = arith.constant 144 : index
    %c0_6 = arith.constant 0 : index
    %5 = vector.load %arg1[%c144, %c0_6] : memref<568x128xf32, #tpu.memory_space<vmem>>, vector<144x128xf32>
    %c288 = arith.constant 288 : index
    %c0_7 = arith.constant 0 : index
    %6 = vector.load %arg1[%c288, %c0_7] : memref<568x128xf32, #tpu.memory_space<vmem>>, vector<1x128xf32>
    %c296 = arith.constant 296 : index
    %c0_8 = arith.constant 0 : index
    %7 = vector.load %arg1[%c296, %c0_8] : memref<568x128xf32, #tpu.memory_space<vmem>>, vector<128x128xf32>
    %c424 = arith.constant 424 : index
    %c0_9 = arith.constant 0 : index
    %8 = vector.load %arg1[%c424, %c0_9] : memref<568x128xf32, #tpu.memory_space<vmem>>, vector<1x128xf32>
    %c432 = arith.constant 432 : index
    %c0_10 = arith.constant 0 : index
    %9 = vector.load %arg1[%c432, %c0_10] : memref<568x128xf32, #tpu.memory_space<vmem>>, vector<128x128xf32>
    %c560 = arith.constant 560 : index
    %c0_11 = arith.constant 0 : index
    %10 = vector.load %arg1[%c560, %c0_11] : memref<568x128xf32, #tpu.memory_space<vmem>>, vector<1x128xf32>
    %11 = vector.extract_strided_slice %0 {offsets = [0, 0], sizes = [7, 8], strides = [1, 1]} : vector<16x8xf32> to vector<7x8xf32>
    %12 = vector.extract_strided_slice %0 {offsets = [8, 0], sizes = [7, 8], strides = [1, 1]} : vector<16x8xf32> to vector<7x8xf32>
    %13 = tpu.concatenate %11, %12 in 0 : vector<7x8xf32>, vector<7x8xf32> -> vector<14x8xf32>
    %14 = vector.extract_strided_slice %0 {offsets = [1, 0], sizes = [7, 8], strides = [1, 1]} : vector<16x8xf32> to vector<7x8xf32>
    %15 = vector.extract_strided_slice %0 {offsets = [9, 0], sizes = [7, 8], strides = [1, 1]} : vector<16x8xf32> to vector<7x8xf32>
    %16 = tpu.concatenate %14, %15 in 0 : vector<7x8xf32>, vector<7x8xf32> -> vector<14x8xf32>
    %17 = tpu.concatenate %13, %16 in 1 : vector<14x8xf32>, vector<14x8xf32> -> vector<14x16xf32>
    %cst = arith.constant dense<0.000000e+00> : vector<14x56xf32>
    %18 = tpu.matmul %17, %1, %cst {dimension_numbers = #tpu.dot_dimension_numbers<[1], [0], [0], [1], [0, 0, 1, 1], [], []>} : vector<14x16xf32>, vector<16x56xf32>, vector<14x56xf32> -> vector<14x56xf32>
    %19 = vector.broadcast %2 : vector<1x56xf32> to vector<14x56xf32>
    %20 = arith.addf %18, %19 : vector<14x56xf32>
    %cst_12 = arith.constant 0.000000e+00 : f32
    %21 = vector.broadcast %cst_12 : f32 to vector<14x56xf32>
    %22 = arith.maximumf %20, %21 : vector<14x56xf32>
    %23 = vector.extract_strided_slice %22 {offsets = [0, 0], sizes = [6, 56], strides = [1, 1]} : vector<14x56xf32> to vector<6x56xf32>
    %24 = vector.extract_strided_slice %22 {offsets = [7, 0], sizes = [6, 56], strides = [1, 1]} : vector<14x56xf32> to vector<6x56xf32>
    %25 = tpu.concatenate %23, %24 in 0 : vector<6x56xf32>, vector<6x56xf32> -> vector<12x56xf32>
    %26 = vector.extract_strided_slice %22 {offsets = [1, 0], sizes = [6, 56], strides = [1, 1]} : vector<14x56xf32> to vector<6x56xf32>
    %27 = vector.extract_strided_slice %22 {offsets = [8, 0], sizes = [6, 56], strides = [1, 1]} : vector<14x56xf32> to vector<6x56xf32>
    %28 = tpu.concatenate %26, %27 in 0 : vector<6x56xf32>, vector<6x56xf32> -> vector<12x56xf32>
    %29 = tpu.concatenate %25, %28 in 1 : vector<12x56xf32>, vector<12x56xf32> -> vector<12x112xf32>
    %cst_13 = arith.constant dense<0.000000e+00> : vector<12x96xf32>
    %30 = tpu.matmul %29, %3, %cst_13 {dimension_numbers = #tpu.dot_dimension_numbers<[1], [0], [0], [1], [0, 0, 1, 1], [], []>} : vector<12x112xf32>, vector<112x96xf32>, vector<12x96xf32> -> vector<12x96xf32>
    %31 = vector.broadcast %4 : vector<1x96xf32> to vector<12x96xf32>
    %32 = arith.addf %30, %31 : vector<12x96xf32>
    %cst_14 = arith.constant 0.000000e+00 : f32
    %33 = vector.broadcast %cst_14 : f32 to vector<12x96xf32>
    %34 = arith.maximumf %32, %33 : vector<12x96xf32>
    %35 = vector.extract_strided_slice %34 {offsets = [0, 0], sizes = [12, 16], strides = [1, 1]} : vector<12x96xf32> to vector<12x16xf32>
    %36 = vector.extract_strided_slice %34 {offsets = [0, 32], sizes = [12, 16], strides = [1, 1]} : vector<12x96xf32> to vector<12x16xf32>
    %37 = vector.extract_strided_slice %34 {offsets = [0, 64], sizes = [12, 16], strides = [1, 1]} : vector<12x96xf32> to vector<12x16xf32>
    %38 = tpu.concatenate %35, %36, %37 in 1 : vector<12x16xf32>, vector<12x16xf32>, vector<12x16xf32> -> vector<12x48xf32>
    %39 = vector.extract_strided_slice %34 {offsets = [0, 16], sizes = [12, 16], strides = [1, 1]} : vector<12x96xf32> to vector<12x16xf32>
    %40 = vector.extract_strided_slice %34 {offsets = [0, 48], sizes = [12, 16], strides = [1, 1]} : vector<12x96xf32> to vector<12x16xf32>
    %41 = vector.extract_strided_slice %34 {offsets = [0, 80], sizes = [12, 16], strides = [1, 1]} : vector<12x96xf32> to vector<12x16xf32>
    %42 = tpu.concatenate %39, %40, %41 in 1 : vector<12x16xf32>, vector<12x16xf32>, vector<12x16xf32> -> vector<12x48xf32>
    %43 = arith.maximumf %38, %42 : vector<12x48xf32>
    %44 = vector.extract_strided_slice %43 {offsets = [0, 0], sizes = [1, 48], strides = [1, 1]} : vector<12x48xf32> to vector<1x48xf32>
    %45 = vector.extract_strided_slice %43 {offsets = [1, 0], sizes = [1, 48], strides = [1, 1]} : vector<12x48xf32> to vector<1x48xf32>
    %46 = arith.maximumf %44, %45 : vector<1x48xf32>
    %47 = vector.extract_strided_slice %43 {offsets = [2, 0], sizes = [1, 48], strides = [1, 1]} : vector<12x48xf32> to vector<1x48xf32>
    %48 = vector.extract_strided_slice %43 {offsets = [3, 0], sizes = [1, 48], strides = [1, 1]} : vector<12x48xf32> to vector<1x48xf32>
    %49 = arith.maximumf %47, %48 : vector<1x48xf32>
    %50 = vector.extract_strided_slice %43 {offsets = [4, 0], sizes = [1, 48], strides = [1, 1]} : vector<12x48xf32> to vector<1x48xf32>
    %51 = vector.extract_strided_slice %43 {offsets = [5, 0], sizes = [1, 48], strides = [1, 1]} : vector<12x48xf32> to vector<1x48xf32>
    %52 = arith.maximumf %50, %51 : vector<1x48xf32>
    %53 = tpu.concatenate %46, %49, %52 in 1 : vector<1x48xf32>, vector<1x48xf32>, vector<1x48xf32> -> vector<1x144xf32>
    %54 = vector.extract_strided_slice %43 {offsets = [6, 0], sizes = [1, 48], strides = [1, 1]} : vector<12x48xf32> to vector<1x48xf32>
    %55 = vector.extract_strided_slice %43 {offsets = [7, 0], sizes = [1, 48], strides = [1, 1]} : vector<12x48xf32> to vector<1x48xf32>
    %56 = arith.maximumf %54, %55 : vector<1x48xf32>
    %57 = vector.extract_strided_slice %43 {offsets = [8, 0], sizes = [1, 48], strides = [1, 1]} : vector<12x48xf32> to vector<1x48xf32>
    %58 = vector.extract_strided_slice %43 {offsets = [9, 0], sizes = [1, 48], strides = [1, 1]} : vector<12x48xf32> to vector<1x48xf32>
    %59 = arith.maximumf %57, %58 : vector<1x48xf32>
    %60 = vector.extract_strided_slice %43 {offsets = [10, 0], sizes = [1, 48], strides = [1, 1]} : vector<12x48xf32> to vector<1x48xf32>
    %61 = vector.extract_strided_slice %43 {offsets = [11, 0], sizes = [1, 48], strides = [1, 1]} : vector<12x48xf32> to vector<1x48xf32>
    %62 = arith.maximumf %60, %61 : vector<1x48xf32>
    %63 = tpu.concatenate %56, %59, %62 in 1 : vector<1x48xf32>, vector<1x48xf32>, vector<1x48xf32> -> vector<1x144xf32>
    %64 = tpu.concatenate %53, %63 in 0 : vector<1x144xf32>, vector<1x144xf32> -> vector<2x144xf32>
    %cst_15 = arith.constant dense<0.000000e+00> : vector<2x128xf32>
    %65 = tpu.matmul %64, %5, %cst_15 {dimension_numbers = #tpu.dot_dimension_numbers<[1], [0], [0], [1], [0, 0, 1, 1], [], []>} : vector<2x144xf32>, vector<144x128xf32>, vector<2x128xf32> -> vector<2x128xf32>
    %66 = vector.broadcast %6 : vector<1x128xf32> to vector<2x128xf32>
    %67 = arith.addf %65, %66 : vector<2x128xf32>
    %cst_16 = arith.constant 0.000000e+00 : f32
    %68 = vector.broadcast %cst_16 : f32 to vector<2x128xf32>
    %69 = arith.maximumf %67, %68 : vector<2x128xf32>
    %cst_17 = arith.constant dense<0.000000e+00> : vector<2x128xf32>
    %70 = tpu.matmul %69, %7, %cst_17 {dimension_numbers = #tpu.dot_dimension_numbers<[1], [0], [0], [1], [0, 0, 1, 1], [], []>} : vector<2x128xf32>, vector<128x128xf32>, vector<2x128xf32> -> vector<2x128xf32>
    %71 = vector.broadcast %8 : vector<1x128xf32> to vector<2x128xf32>
    %72 = arith.addf %70, %71 : vector<2x128xf32>
    %cst_18 = arith.constant 0.000000e+00 : f32
    %73 = vector.broadcast %cst_18 : f32 to vector<2x128xf32>
    %74 = arith.maximumf %72, %73 : vector<2x128xf32>
    %cst_19 = arith.constant dense<0.000000e+00> : vector<2x128xf32>
    %75 = tpu.matmul %74, %9, %cst_19 {dimension_numbers = #tpu.dot_dimension_numbers<[1], [0], [0], [1], [0, 0, 1, 1], [], []>} : vector<2x128xf32>, vector<128x128xf32>, vector<2x128xf32> -> vector<2x128xf32>
    %76 = vector.broadcast %10 : vector<1x128xf32> to vector<2x128xf32>
    %77 = arith.addf %75, %76 : vector<2x128xf32>
    %78 = math.tanh %77 : vector<2x128xf32>
    %c0_20 = arith.constant 0 : index
    %c0_21 = arith.constant 0 : index
    %79 = vector.load %arg2[%c0_20, %c0_21] : memref<2x128xf32, #tpu.memory_space<vmem>>, vector<2x128xf32>
    tpu.vector_store %arg2[%c0_20, %c0_21], %78 {strides = array<i32>} : memref<2x128xf32, #tpu.memory_space<vmem>>, vector<2x128xf32>,
    return
  }
}

</mosaic_0001>

<bundles_post_ra>
// kernel: tpu_custom_call.1
= control target key start
LH: loop header
LB: loop body
LE: loop exit
PB: predicated region body
PF: predicated region fallthrough
CT: control target
= control target key end

     0   :  { %7 = vsyncpa [#allocation3], 0  ;;  %s523_s0 = inlined_call_operand.vmem [shape: f32[16,8], index: 0, kind: input, shape index: {}]   ;;  %s524_s1 = inlined_call_operand.hbm [shape: f32[568,128], index: 1, kind: input, shape index: {}]   ;;  %s525_s2 = inlined_call_operand.hbm [shape: f32[2,128], index: 2, kind: output, shape index: {}]  }
   0x1   :  { %8 = vsyncpa [#allocation4], 0  ;;  %s15_s11 = sshll.u32 %s524_s1, 4  ;;  %s467_s12 = smov [#allocation2]   ;;  %s16_s11 = int_to_ptr.hbm [resolvable:$true] %s15_s11 }
   0x2   :  { %s17_s13 = sshll.u32 %s467_s12, 4  ;;  %s468_s14 = smov 128   ;;  %s18_s13 = int_to_ptr.vmem [resolvable:$true] %s17_s13 }
   0x3   :  { %s469_s15 = smov 8  }
   0x4   :  { %23 = dma.hbm_to_vmem [thread:$0]  %s16_s11, 9088, %s18_s13, [#allocation3], %s468_s14, %s468_s14, %s469_s15  }
   0x5   :  { %463 = dma.done.wait [#allocation3], 9088  }
   0x6   :  { %464 = vsyncadd [#allocation3], 4294958208  ;;  %v28_v0 = vld [vmem:[%s523_s0] sm:$0xff]  ;;  %v29_v1 = vld [vmem:[%s523_s0 + $0x8] sm:$0xff]  ;;  %vm104_vm0 = vcmask 1046528   ;;  %vm119_vm1 = vcmask 64512  }
   0x7   :  { %v31_v2 = vld [vmem:[#allocation2 + $0x8] sm:$0xff]  ;;  %v107_v3 = vrot.slane %v28_v0, 1  ;;  %v109_v4 = vrot.slane %v29_v1, 2  ;;  %v30_v6 = vld [vmem:[#allocation2] sm:$0xff]  ;;  %v102_v7 = vrot.slane %v29_v1, 1  ;;  %vm123_vm2 = vcmask 130048  }
   0x8   :  { %144 = vmatpush.msra.mxu0 %v31_v2  ;;  %v46_v13 = vld [vmem:[#allocation2 + $0x80] sm:$0xff]  ;;  %v45_v14 = vld [vmem:[#allocation2 + $0x78] sm:$0xff]  ;;  %v44_v15 = vld [vmem:[#allocation2 + $0x70] sm:$0xff]  ;;  %vm162_vm3 = vcmask 1045504   ;;  %s470_s0 = smov 56   ;;  %vm175_vm4 = vcmask 457728  }
   0x9   :  { %v111_v5 = vsel %vm104_vm0, %v107_v3, %v109_v4  ;;  %v105_v8 = vsel %vm104_vm0, %v28_v0, %v102_v7  ;;  %188 = vmatpush.msra.mxu1 %v46_v13  ;;  %v43_v16 = vld [vmem:[#allocation2 + $0x68] sm:$0xff]  ;;  %v42_v17 = vld [vmem:[#allocation2 + $0x60] sm:$0xff]  ;;  %v41_v19 = vld [vmem:[#allocation2 + $0x58] sm:$0xff]  ;;  %vm179_vm5 = vcmask 916480   ;;  %s471_s1 = smov 112   ;;  %s472_s20 = smov 80  }
   0xa   :  { %113 = vrot.lane.b32.xlu0 %v111_v5, %s469_s15  ;;  %145 = vmatpush.msra.mxu0 %v30_v6  ;;  %v408_v20 = vld [vmem:[#allocation2 + $0x10] ss:$0 sm:$0xff]  ;;  %v39_v22 = vld [vmem:[#allocation2 + $0x48] sm:$0xff]  ;;  %v38_v24 = vld [vmem:[#allocation2 + $0x40] sm:$0xff]  ;;  %s473_s21 = smov 96   ;;  %vm227_vm6 = vcmask 261120  }
   0xb   :  { %189 = vmatpush.msra.mxu1 %v45_v14  ;;  %v40_v21 = vld [vmem:[#allocation2 + $0x50] sm:$0xff]  ;;  %v37_v26 = vld [vmem:[#allocation2 + $0x38] sm:$0xff]  ;;  %v35_v31 = vld [vmem:[#allocation2 + $0x28] sm:$0xff]  ;;  %s474_s22 = smov 48   ;;  %vm279_vm7 = vcmask 1040384   ;;  %vm255_vm8 = vcmask 392192  }
   0xc   :  { %v36_v29 = vld [vmem:[#allocation2 + $0x30] sm:$0xff]  ;;  %v34_v35 = vld [vmem:[#allocation2 + $0x20] sm:$0xff]  ;;  %v33_v39 = vld [vmem:[#allocation2 + $0x18] sm:$0xff]  ;;  %vm257_vm9 = vcmask 785408   ;;  %s475_s23 = smov [#allocation5]   ;;  %s379_s27 = sshll.u32 %s525_s2, 4  ;;  %s380_s27 = int_to_ptr.hbm [resolvable:$true] %s379_s27 }
   0xd   :  { %190 = vmatpush.msra.mxu1 %v44_v15  ;;  %v409_v44 = vld [vmem:[#allocation2 + $0x88] ss:$0 sm:$0xff]  ;;  %v62_v13 = vld [vmem:[#allocation2 + $0x100] sm:$0xff]  ;;  %v61_v14 = vld [vmem:[#allocation2 + $0xf8] sm:$0xff]  ;;  %s377_s24 = sshll.u32 %s475_s23, 4  ;;  %s378_s24 = int_to_ptr.vmem [resolvable:$true] %s377_s24 }
   0xe   :  { %v65_v15 = vld [vmem:[#allocation2 + $0x118] sm:$0xff] }
   0xf   :  { %191 = vmatpush.msra.mxu1 %v43_v16  ;;  %v60_v16 = vld [vmem:[#allocation2 + $0xf0] sm:$0xff]  ;;  %320 = vmatpush.msra.mxu3 %v65_v15  ;;  %v85_v15 = vld [vmem:[#allocation2 + $0x1b8] sm:$0xff] }
  0x11   :  { %192 = vmatpush.msra.mxu1 %v42_v17  ;;  %v59_v17 = vld [vmem:[#allocation2 + $0xe8] sm:$0xff] }
  0x12   :  { %115 = vrot.lane.b32.xlu0 %v109_v4, %s469_s15 }
  0x13   :  { %193 = vmatpush.msra.mxu1 %v41_v19  ;;  %v57_v19 = vld [vmem:[#allocation2 + $0xd8] sm:$0xff] }
  0x15   :  { %194 = vmatpush.msra.mxu1 %v40_v21  ;;  %v55_v21 = vld [vmem:[#allocation2 + $0xc8] sm:$0xff] }
  0x17   :  { %195 = vmatpush.msra.mxu1 %v39_v22  ;;  %v54_v22 = vld [vmem:[#allocation2 + $0xc0] sm:$0xff] }
  0x19   :  { %196 = vmatpush.msra.mxu1 %v38_v24  ;;  %v52_v24 = vld [vmem:[#allocation2 + $0xb0] sm:$0xff] }
  0x1b   :  { %197 = vmatpush.msra.mxu1 %v37_v26  ;;  %v51_v26 = vld [vmem:[#allocation2 + $0xa8] sm:$0xff] }
  0x1d   :  { %198 = vmatpush.msra.mxu1 %v36_v29  ;;  %v48_v29 = vld [vmem:[#allocation2 + $0x90] sm:$0xff] }
  0x1f   :  { %199 = vmatpush.msra.mxu1 %v35_v31  ;;  %v81_v31 = vld [vmem:[#allocation2 + $0x198] sm:$0xff] }
  0x21   :  { %200 = vmatpush.msra.mxu1 %v34_v35  ;;  %v77_v35 = vld [vmem:[#allocation2 + $0x178] sm:$0xff] }
  0x23   :  { %201 = vmatpush.msra.mxu1 %v33_v39 }
  0x7c   :  { %v114_v9 = vpop.permute.xlu0 %113 }
  0x7d   :  { %v120_v10 = vsel %vm119_vm1, %v105_v8, %v114_v9 }
  0x7e   :  { %389 = vmatmul.msk.f32.vlgmr.msra.gmra.mxu0 %vm123_vm2, %v120_v10 }
  0x84   :  { %v116_v11 = vpop.permute.xlu0 %115 }
  0x85   :  { %v121_v12 = vsel %vm119_vm1, %v102_v7, %v116_v11 }
  0x86   :  { %390 = vmatmul.msk.f32.gmra.mxu0 %vm123_vm2, %v121_v12  ;;  %v63_v12 = vld [vmem:[#allocation2 + $0x108] sm:$0xff] }
  0x87   :  { %286 = vmatpush.msra.mxu2 %v63_v12 }
  0x89   :  { %287 = vmatpush.msra.mxu2 %v62_v13 }
  0x8b   :  { %288 = vmatpush.msra.mxu2 %v61_v14  ;;  %v86_v14 = vld [vmem:[#allocation2 + $0x1c0] sm:$0xff] }
  0x8d   :  { %289 = vmatpush.msra.mxu2 %v60_v16  ;;  %v84_v16 = vld [vmem:[#allocation2 + $0x1b0] sm:$0xff] }
  0x8f   :  { %290 = vmatpush.msra.mxu2 %v59_v17  ;;  %v411_v17 = vld [vmem:[#allocation2 + $0x1a8] ss:$0 sm:$0xff] }
  0xfb   :  { %v147_v18 = vpop.f32.mrf.mxu0 }
  0xfc   :  { %v148_v23 = vadd.f32 %v408_v20, %v147_v18  ;;  %v58_v18 = vld [vmem:[#allocation2 + $0xe0] sm:$0xff] }
  0xfd   :  { %291 = vmatpush.msra.mxu2 %v58_v18 }
  0xfe   :  { %v153_v27 = vmax.f32 %v148_v23, 0.0  ;;  %v53_v23 = vld [vmem:[#allocation2 + $0xb8] sm:$0xff] }
  0xff   :  { %292 = vmatpush.msra.mxu2 %v57_v19 }
 0x100   :  { %v157_v32 = vrot.slane %v153_v27, 1 }
 0x103   :  { %v150_v25 = vpop.f32.mrf.mxu0 }
 0x104   :  { %v151_v28 = vadd.f32 %v408_v20, %v150_v25  ;;  %v56_v20 = vld [vmem:[#allocation2 + $0xd0] sm:$0xff] }
 0x105   :  { %293 = vmatpush.msra.mxu2 %v56_v20  ;;  %v64_v25 = vld [vmem:[#allocation2 + $0x110] sm:$0xff] }
 0x106   :  { %v154_v30 = vmax.f32 %v151_v28, 0.0  ;;  %321 = vmatpush.msra.mxu3 %v64_v25  ;;  %v49_v28 = vld [vmem:[#allocation2 + $0x98] sm:$0xff] }
 0x107   :  { %294 = vmatpush.msra.mxu2 %v55_v21  ;;  %v412_v21 = vld [vmem:[#allocation2 + $0x230] ss:$0 sm:$0xff] }
 0x108   :  { %v158_v33 = vrot.slane %v154_v30, 1  ;;  %v165_v34 = vrot.slane %v154_v30, 2  ;;  %v82_v30 = vld [vmem:[#allocation2 + $0x1a0] sm:$0xff] }
 0x109   :  { %295 = vmatpush.msra.mxu2 %v54_v22  ;;  %328 = vmatpush.msrb.mxu0 %v82_v30 }
 0x10a   :  { %v167_v36 = vsel %vm162_vm3, %v157_v32, %v165_v34  ;;  %v159_v37 = vsel %vm104_vm0, %v157_v32, %v158_v33  ;;  %v80_v32 = vld [vmem:[#allocation2 + $0x190] sm:$0xff] }
 0x10b   :  { %169 = vrot.lane.b32.xlu1 %v167_v36, %s470_s0  ;;  %v163_v38 = vsel %vm162_vm3, %v153_v27, %v159_v37  ;;  %296 = vmatpush.msra.mxu2 %v53_v23  ;;  %v50_v27 = vld [vmem:[#allocation2 + $0xa0] sm:$0xff]  ;;  %v76_v36 = vld [vmem:[#allocation2 + $0x170] sm:$0xff]  ;;  %v75_v37 = vld [vmem:[#allocation2 + $0x168] sm:$0xff] }
 0x10c   :  { %329 = vmatpush.msrb.mxu0 %v81_v31 }
 0x10d   :  { %297 = vmatpush.msra.mxu2 %v52_v24 }
 0x10e   :  { %330 = vmatpush.msrb.mxu0 %v80_v32 }
 0x10f   :  { %298 = vmatpush.msra.mxu2 %v51_v26 }
 0x111   :  { %299 = vmatpush.msra.mxu2 %v50_v27 }
 0x113   :  { %171 = vrot.lane.b32.xlu1 %v165_v34, %s470_s0  ;;  %300 = vmatpush.msra.mxu2 %v49_v28  ;;  %v78_v34 = vld [vmem:[#allocation2 + $0x180] sm:$0xff] }
 0x115   :  { %301 = vmatpush.msra.mxu2 %v48_v29 }
 0x17d   :  { %v170_v40 = vpop.permute.xlu1 %169 }
 0x17e   :  { %v176_v41 = vsel %vm175_vm4, %v163_v38, %v170_v40 }
 0x17f   :  { %391 = vmatmul.msk.f32.vlgmr.msra.gmra.mxu1 %vm179_vm5, %v176_v41 }
 0x185   :  { %v172_v42 = vpop.permute.xlu1 %171 }
 0x186   :  { %v177_v43 = vsel %vm175_vm4, %v158_v33, %v172_v42  ;;  %v79_v33 = vld [vmem:[#allocation2 + $0x188] sm:$0xff] }
 0x187   :  { %392 = vmatmul.msk.f32.gmra.mxu1 %vm179_vm5, %v177_v43  ;;  %331 = vmatpush.msrb.mxu0 %v79_v33 }
 0x189   :  { %332 = vmatpush.msrb.mxu0 %v78_v34 }
 0x18b   :  { %333 = vmatpush.msrb.mxu0 %v77_v35 }
 0x18d   :  { %334 = vmatpush.msrb.mxu0 %v76_v36 }
 0x18f   :  { %335 = vmatpush.msrb.mxu0 %v75_v37 }
 0x1fc   :  { %v203_v45 = vpop.f32.mrf.mxu1 }
 0x1fd   :  { %v204_v46 = vadd.f32 %v409_v44, %v203_v45 }
 0x1ff   :  { %v209_v47 = vmax.f32 %v204_v46, 0.0 }
 0x201   :  { %213 = vrot.lane.b32.xlu1 %v209_v47, %s471_s1 }
 0x204   :  { %v206_v48 = vpop.f32.mrf.mxu1 }
 0x205   :  { %v207_v49 = vadd.f32 %v409_v44, %v206_v48 }
 0x207   :  { %v210_v50 = vmax.f32 %v207_v49, 0.0 }
 0x209   :  { %232 = vrot.lane.b32.xlu0 %v210_v50, %s472_s20  ;;  %215 = vrot.lane.b32.xlu2 %v210_v50, %s471_s1 }
 0x211   :  { %221 = vrot.lane.b32.xlu2 %v210_v50, %s473_s21  ;;  %230 = vrot.lane.b32.xlu0 %v209_v47, %s472_s20 }
 0x219   :  { %219 = vrot.lane.b32.xlu2 %v209_v47, %s473_s21 }
 0x263   :  { %v216_v51 = vpop.permute.xlu2 %215 }
 0x264   :  { %v226_v53 = vsel %vm123_vm2, %v210_v50, %v216_v51 }
 0x26b   :  { %v222_v52 = vpop.permute.xlu2 %221 }
 0x26c   :  { %v237_v54 = vsel %vm123_vm2, %v216_v51, %v222_v52  ;;  %v229_v56 = vsel %vm227_vm6, %v226_v53, %v222_v52  ;;  %v74_v51 = vld [vmem:[#allocation2 + $0x160] sm:$0xff]  ;;  %v73_v52 = vld [vmem:[#allocation2 + $0x158] sm:$0xff]  ;;  %v72_v53 = vld [vmem:[#allocation2 + $0x150] sm:$0xff] }
 0x26d   :  { %336 = vmatpush.msrb.mxu0 %v74_v51 }
 0x26f   :  { %337 = vmatpush.msrb.mxu0 %v73_v52 }
 0x271   :  { %338 = vmatpush.msrb.mxu0 %v72_v53 }
 0x273   :  { %v214_v59 = vpop.permute.xlu1 %213  ;;  %v220_v61 = vpop.permute.xlu2 %219 }
 0x274   :  { %v225_v62 = vsel %vm123_vm2, %v209_v47, %v214_v59  ;;  %v236_v0 = vsel %vm123_vm2, %v214_v59, %v220_v61  ;;  %v99_v59 = vld [vmem:[#allocation2 + $0x228] sm:$0xff] }
 0x275   :  { %v228_v3 = vsel %vm227_vm6, %v225_v62, %v220_v61  ;;  %350 = vmatpush.msrb.mxu3 %v99_v59  ;;  %v97_v61 = vld [vmem:[#allocation2 + $0x218] sm:$0xff]  ;;  %v96_v62 = vld [vmem:[#allocation2 + $0x210] sm:$0xff] }
 0x27b   :  { %v233_v55 = vpop.permute.xlu0 %232 }
 0x27c   :  { %v239_v57 = vsel %vm227_vm6, %v237_v54, %v233_v55  ;;  %v71_v54 = vld [vmem:[#allocation2 + $0x148] sm:$0xff]  ;;  %v70_v55 = vld [vmem:[#allocation2 + $0x140] sm:$0xff] }
 0x27d   :  { %v241_v58 = vmax.f32 %v229_v56, %v239_v57  ;;  %339 = vmatpush.msrb.mxu0 %v71_v54  ;;  %v69_v56 = vld [vmem:[#allocation2 + $0x138] sm:$0xff]  ;;  %v68_v57 = vld [vmem:[#allocation2 + $0x130] sm:$0xff] }
 0x27f   :  { %v260_v60 = vrot.slane %v241_v58, 1  ;;  %340 = vmatpush.msrb.mxu0 %v70_v55 }
 0x281   :  { %v262_v63 = vmax.f32 %v241_v58, %v260_v60  ;;  %341 = vmatpush.msrb.mxu0 %v69_v56  ;;  %v67_v58 = vld [vmem:[#allocation2 + $0x128] sm:$0xff]  ;;  %v98_v60 = vld [vmem:[#allocation2 + $0x220] sm:$0xff] }
 0x282   :  { %351 = vmatpush.msrb.mxu3 %v98_v60 }
 0x283   :  { %v231_v1 = vpop.permute.xlu0 %230  ;;  %v268_v2 = vrot.slane %v262_v63, 4  ;;  %v264_v10 = vrot.slane %v262_v63, 2  ;;  %342 = vmatpush.msrb.mxu0 %v68_v57  ;;  %v95_v63 = vld [vmem:[#allocation2 + $0x208] sm:$0xff] }
 0x284   :  { %v238_v4 = vsel %vm227_vm6, %v236_v0, %v231_v1  ;;  %352 = vmatpush.msrb.mxu3 %v97_v61  ;;  %v94_v0 = vld [vmem:[#allocation2 + $0x200] sm:$0xff]  ;;  %v93_v1 = vld [vmem:[#allocation2 + $0x1f8] sm:$0xff] }
 0x285   :  { %v240_v5 = vmax.f32 %v228_v3, %v238_v4  ;;  %269 = vrot.lane.b32.xlu2 %v268_v2, %s473_s21  ;;  %343 = vmatpush.msrb.mxu0 %v67_v58  ;;  %v92_v2 = vld [vmem:[#allocation2 + $0x1f0] sm:$0xff]  ;;  %v91_v3 = vld [vmem:[#allocation2 + $0x1e8] sm:$0xff]  ;;  %v90_v4 = vld [vmem:[#allocation2 + $0x1e0] sm:$0xff] }
 0x286   :  { %353 = vmatpush.msrb.mxu3 %v96_v62 }
 0x287   :  { %v243_v6 = vrot.slane %v240_v5, 1 }
 0x288   :  { %354 = vmatpush.msrb.mxu3 %v95_v63 }
 0x289   :  { %v513_v7 = vmax.f32 %v240_v5, %v243_v6  ;;  %v89_v5 = vld [vmem:[#allocation2 + $0x1d8] sm:$0xff]  ;;  %v88_v6 = vld [vmem:[#allocation2 + $0x1d0] sm:$0xff] }
 0x28a   :  { %355 = vmatpush.msrb.mxu3 %v94_v0 }
 0x28b   :  { %v251_v8 = vrot.slane %v513_v7, 4  ;;  %v247_v9 = vrot.slane %v513_v7, 2 }
 0x28c   :  { %356 = vmatpush.msrb.mxu3 %v93_v1 }
 0x28d   :  { %252 = vrot.lane.b32.xlu0 %v251_v8, %s473_s21  ;;  %v403_v11 = vpack.i.bf16 %v247_v9, %v264_v10  ;;  %v87_v8 = vld [vmem:[#allocation2 + $0x1c8] sm:$0xff] }
 0x28e   :  { %357 = vmatpush.msrb.mxu3 %v92_v2 }
 0x28f   :  { %404 = vrot.lane.b32.xlu1 %v403_v11, %s474_s22 }
 0x290   :  { %358 = vmatpush.msrb.mxu3 %v91_v3 }
 0x292   :  { %359 = vmatpush.msrb.mxu3 %v90_v4 }
 0x294   :  { %360 = vmatpush.msrb.mxu3 %v89_v5 }
 0x296   :  { %361 = vmatpush.msrb.mxu3 %v88_v6 }
 0x298   :  { %362 = vmatpush.msrb.mxu3 %v87_v8 }
 0x29a   :  { %363 = vmatpush.msrb.mxu3 %v86_v14 }
 0x29c   :  { %364 = vmatpush.msrb.mxu3 %v85_v15 }
 0x29e   :  { %365 = vmatpush.msrb.mxu3 %v84_v16 }
 0x2df   :  { %v270_v38 = vpop.permute.xlu2 %269 }
 0x2e0   :  { %v276_v39 = vrot.slane %v270_v38, 5 }
 0x2ff   :  { %v253_v40 = vpop.permute.xlu0 %252 }
 0x300   :  { %v281_v41 = vsel %vm279_vm7, %v253_v40, %v276_v39 }
 0x301   :  { %393 = vmatmul.msk.f32.vlgmr.msra.gmra.mxu3 %vm123_vm2, %v281_v41  ;;  %v405_v42 = vpop.permute.xlu1 %404 }
 0x302   :  { %v407_v43 = vunpack.i.h.bf16 %v405_v42  ;;  %v406_v44 = vunpack.i.l.bf16 %v405_v42 }
 0x304   :  { %v272_v45 = vsel %vm255_vm8, %v513_v7, %v406_v44  ;;  %v256_v46 = vsel %vm255_vm8, %v513_v7, %v407_v43  ;;  %v410_v7 = vld [vmem:[#allocation2 + $0x120] ss:$0 sm:$0xff] }
 0x305   :  { %v273_v47 = vsel %vm257_vm9, %v272_v45, %v270_v38  ;;  %v258_v49 = vsel %vm257_vm9, %v256_v46, %v253_v40 }
 0x306   :  { %v275_v48 = vrot.slane %v273_v47, 5 }
 0x308   :  { %v280_v50 = vsel %vm279_vm7, %v258_v49, %v275_v48 }
 0x309   :  { %302 = vmatmul.f32.vlgmr.msra.gmra.mxu2 %v280_v50 }
 0x384   :  { %v323_v11 = vpop.f32.mrf.mxu3 }
 0x38c   :  { %v303_v9 = vpop.f32.mrf.mxu2 }
 0x38d   :  { %v304_v10 = vadd.f32 %v410_v7, %v303_v9 }
 0x38f   :  { %v324_v12 = vadd.f32 %v323_v11, %v304_v10 }
 0x391   :  { %v326_v13 = vmax.f32 %v324_v12, 0.0 }
 0x393   :  { %344 = vmatmul.f32.vlgmr.msrb.gmra.mxu0 %v326_v13 }
 0x410   :  { %v345_v18 = vpop.f32.mrf.mxu0 }
 0x411   :  { %v346_v19 = vadd.f32 %v411_v17, %v345_v18 }
 0x413   :  { %v348_v20 = vmax.f32 %v346_v19, 0.0 }
 0x415   :  { %366 = vmatmul.f32.vlgmr.msrb.gmra.mxu3 %v348_v20 }
 0x498   :  { %v367_v22 = vpop.f32.mrf.mxu3 }
 0x499   :  { %v368_v23 = vadd.f32 %v412_v21, %v367_v22 }
 0x49b   :  { %413 = vtanh.f32 %v368_v23 }
 0x4a1   :  { %v414_v24 = vpop.eup %413 }
 0x4a2   :  { %371 = vst [vmem:[#allocation5] sm:$0x3] %v414_v24 }
 0x4a3   :  { %382 = dma.vmem_to_hbm [thread:$0]  %s378_s24, 32, %s380_s27, [#allocation4]  }
 0x4a4   :  { %465 = dma.done.wait [#allocation4], 32  }
 0x4a5   :  { %466 = vsyncadd [#allocation4], 4294967264 }
 0x4a6   :  { %387 = vsyncpa [#allocation3], 1 }
 0x4a7   :  { %388 = vsyncpa [#allocation4], 1 }

</bundles_post_ra>
